<compile_context>
chip_gen: v7x
topology: tpu7x:2x2x1
jax: 0.10.0
libtpu: 0.0.40
codegen_flags: <defaults>
</compile_context>

<pallas_src>
import functools

import jax
import jax.numpy as jnp
from jax import lax
from jax.experimental import pallas as pl
from jax.experimental.pallas import tpu as pltpu


def _cdiv(a, b):
    return (a + b - 1) // b


def _round_up(x, m):
    return _cdiv(x, m) * m


def _tpu_vmem_capacity_bytes():
    try:
        return int(pltpu.get_tpu_info().vmem_capacity_bytes)
    except Exception:
        return 64 * 1024 * 1024  # conservative fallback: v7x per-TensorCore VMEM


def _default_num_shards():
    # Only v7x has two TensorCores per chip; on single-TC v5e/v6e a leading
    # "parallel" axis is just a sequential split (extra output slabs + an
    # extra combine with zero parallelism gained).
    try:
        kind = jax.devices()[0].device_kind.lower()
    except Exception:
        return 1
    return 2 if "v7" in kind else 1


def _neck_kernel(tiles_per_shard, lo_ref, hi_ref, x_ref, gid_ref,
                 w1_ref, b1_ref, w2_ref, b2_ref, out_ref):
    """Per node tile: MLP, then chunked segment-max into the resident slab."""
    s = pl.program_id(0)
    i = pl.program_id(1)
    t = s * tiles_per_shard + i

    # Resident (G_pad, F1_pad) accumulator for this shard: zero once per shard.
    @pl.when(i == 0)
    def _():
        out_ref[...] = jnp.zeros_like(out_ref)

    lo_c = lo_ref[t]  # first 8-segment chunk touched by this node tile
    hi_c = hi_ref[t]  # one past the last chunk (empty range => padded tile)

    @pl.when(lo_c < hi_c)
    def _():
        # ---- MLP on this node tile (MXU matmuls, f32 accumulation) ----
        x = x_ref[...]                                                 # (TN, E)
        h1 = jnp.dot(x, w1_ref[...], preferred_element_type=jnp.float32)
        h1 = jnp.maximum(h1 + b1_ref[...], 0.0)                        # (TN, F0)
        h1 = h1.astype(w2_ref.dtype)
        h2 = jnp.dot(h1, w2_ref[...], preferred_element_type=jnp.float32)
        h2 = jnp.maximum(h2 + b2_ref[...], 0.0)                        # (TN, F1p) >= 0

        gid = gid_ref[...]                                             # (TN, 1) i32, pad rows = -1

        # ---- Segment max, 8 segments at a time, only over chunks present ----
        def chunk_body(c, carry):
            g0 = pl.multiple_of(c * 8, 8)
            rows = []
            for dg in range(8):                                        # static 8-wide unroll
                masked = jnp.where(gid == (g0 + dg), h2, 0.0)          # 0 is max-neutral
                rows.append(jnp.max(masked, axis=0, keepdims=True))    # (1, F1p)
            chunk = jnp.concatenate(rows, axis=0)                      # (8, F1p)
            cur = out_ref[pl.ds(g0, 8), :]
            out_ref[pl.ds(g0, 8), :] = jnp.maximum(cur, chunk)         # aligned 8-sublane store
            return carry

        lax.fori_loop(lo_c, hi_c, chunk_body, 0)


def neck_forward(batch_gnn_embed, gather_idx, num_graph, params, *,
                 tile_n=512, num_shards=None, use_bf16=True,
                 vmem_budget_bytes=None):
    """Pallas Neck forward.

    batch_gnn_embed: f32[num_nodes, embed_size]
    gather_idx:      i32[num_nodes] in [0, num_graph)
    returns:         f32[num_graph, filters[1]]
    """
    w1, b1, w2, b2 = params
    n_nodes, embed_size = batch_gnn_embed.shape
    f0 = w1.shape[1]
    f1 = w2.shape[1]

    if num_shards is None:
        num_shards = _default_num_shards()
    num_shards = max(1, int(num_shards))

    vmem_cap = _tpu_vmem_capacity_bytes()
    if vmem_budget_bytes is None:
        # ~28 MiB on 64 MiB (v7x) parts, capped at 48 MiB on 128 MiB parts.
        vmem_budget_bytes = min(48 << 20, max(16 << 20, vmem_cap // 2 - (4 << 20)))

    g_pad = _round_up(max(int(num_graph), 1), 8)
    g_chunks = g_pad // 8
    f1_pad = _round_up(f1, 128)

    # Pad second-layer output dim so all output-path stores are lane-dense.
    if f1_pad != f1:
        w2 = jnp.pad(w2, ((0, 0), (0, f1_pad - f1)))
        b2 = jnp.pad(b2, ((0, f1_pad - f1),))

    compute_dtype = jnp.bfloat16 if use_bf16 else jnp.float32
    itemsize = 2 if use_bf16 else 4
    sublane = 16 if use_bf16 else 8  # bf16 packs 16 sublanes per vreg

    x = batch_gnn_embed.astype(compute_dtype)
    w1c = w1.astype(compute_dtype)
    w2c = w2.astype(compute_dtype)
    b1_2d = b1.reshape(1, f0).astype(jnp.float32)
    b2_2d = b2.reshape(1, f1_pad).astype(jnp.float32)

    # ---- Tile sizing under a generation-aware VMEM budget ----
    tile = min(int(tile_n),
               max(sublane, _round_up(_cdiv(n_nodes, num_shards), sublane)))
    tile = _round_up(tile, sublane)

    def vmem_estimate(t):
        bytes_x = 2 * t * embed_size * itemsize                    # double-buffered x tile
        bytes_gid = 2 * t * 128 * 4                                # (t,1) i32 lane-pads to 128
        bytes_w = 2 * (embed_size * f0 + f0 * f1_pad) * itemsize   # weights (conservative 2 bufs)
        bytes_b = 2 * 8 * (f0 + f1_pad) * 4                        # biases, sublane-padded
        bytes_out = 2 * g_pad * f1_pad * 4                         # resident output slab
        bytes_tmp = t * (f0 + f1_pad) * 4                          # h1/h2 live once (scratch)
        return bytes_x + bytes_gid + bytes_w + bytes_b + bytes_out + bytes_tmp

    while tile > sublane and vmem_estimate(tile) > vmem_budget_bytes:
        tile = max(sublane, _round_up(tile // 2, sublane))

    tiles_per_shard = max(1, _cdiv(_cdiv(n_nodes, num_shards), tile))
    num_tiles = num_shards * tiles_per_shard
    n_pad = num_tiles * tile

    # ---- Pad nodes; padded rows get segment id -1 (never matches a segment) ----
    gather_idx = gather_idx.astype(jnp.int32)
    if n_pad != n_nodes:
        x = jnp.pad(x, ((0, n_pad - n_nodes), (0, 0)))
        gather_idx = jnp.pad(gather_idx, ((0, n_pad - n_nodes),),
                             constant_values=-1)
    gid2d = gather_idx.reshape(n_pad, 1)

    # ---- Per-tile 8-segment chunk ranges (scalar-prefetched into SMEM) ----
    gid_tiles = gather_idx.reshape(num_tiles, tile)
    valid = gid_tiles >= 0
    seg_lo = jnp.min(jnp.where(valid, gid_tiles, jnp.int32(2 ** 30)), axis=1)
    seg_hi = jnp.max(gid_tiles, axis=1)                 # -1 for fully padded tiles
    chunk_lo = jnp.clip(seg_lo // 8, 0, g_chunks).astype(jnp.int32)
    chunk_hi = jnp.clip(seg_hi // 8 + 1, 0, g_chunks).astype(jnp.int32)

    kernel = functools.partial(_neck_kernel, tiles_per_shard)
    grid = (num_shards, tiles_per_shard)

    cost = pl.CostEstimate(
        flops=2 * n_pad * (embed_size * f0 + f0 * f1_pad),
        transcendentals=0,
        bytes_accessed=(n_pad * embed_size * itemsize
                        + (embed_size * f0 + f0 * f1_pad) * itemsize
                        + n_pad * 4
                        + num_shards * g_pad * f1_pad * 4))

    vmem_limit = int(min(vmem_cap - (8 << 20),
                         max(32 << 20, 2 * vmem_estimate(tile))))

    out = pl.pallas_call(
        kernel,
        out_shape=jax.ShapeDtypeStruct((num_shards, g_pad, f1_pad), jnp.float32),
        grid_spec=pltpu.PrefetchScalarGridSpec(
            num_scalar_prefetch=2,
            grid=grid,
            in_specs=[
                # x node tile
                pl.BlockSpec((tile, embed_size),
                             lambda s, i, lo, hi: (s * tiles_per_shard + i, 0)),
                # gather_idx node tile
                pl.BlockSpec((tile, 1),
                             lambda s, i, lo, hi: (s * tiles_per_shard + i, 0)),
                # full weights / biases, constant block index across the grid
                pl.BlockSpec((embed_size, f0), lambda s, i, lo, hi: (0, 0)),
                pl.BlockSpec((1, f0), lambda s, i, lo, hi: (0, 0)),
                pl.BlockSpec((f0, f1_pad), lambda s, i, lo, hi: (0, 0)),
                pl.BlockSpec((1, f1_pad), lambda s, i, lo, hi: (0, 0)),
            ],
            # One padded (G_pad, F1_pad) slab per shard, resident across the
            # inner node-tile (reduction) axis.
            out_specs=pl.BlockSpec((None, g_pad, f1_pad),
                                   lambda s, i, lo, hi: (s, 0, 0)),
        ),
        compiler_params=pltpu.CompilerParams(
            dimension_semantics=("parallel", "arbitrary"),
            vmem_limit_bytes=vmem_limit),
        cost_estimate=cost,
    )(chunk_lo, chunk_hi, x, gid2d, w1c, b1_2d, w2c, b2_2d)

    # Combine per-shard slabs (post-ReLU values >= 0, zero is neutral), then
    # strip segment / feature padding.
    return jnp.max(out, axis=0)[:num_graph, :f1]


def _reference(x, gather_idx, num_graph, params):
    w1, b1, w2, b2 = params
    h1 = jnp.maximum(x @ w1 + b1, 0.0)
    h2 = jnp.maximum(h1 @ w2 + b2, 0.0)
    out = jnp.zeros((num_graph, w2.shape[1]), jnp.float32)
    for g in range(num_graph):
        m = (gather_idx == g)[:, None]
        out = out.at[g].set(jnp.max(jnp.where(m, h2, 0.0), axis=0))
    return out


if __name__ == "__main__":
    init_a, init_b = -0.1, 0.1

    # Small shapes consistent with the module's forward; num_nodes deliberately
    # not a multiple of the sublane count to exercise padding / tile skipping,
    # and num_graph > 8 to exercise multiple 8-segment chunks.
    num_nodes = 37
    embed_size = 32
    filters = [64, 128]
    num_graph = 10

    key = jax.random.PRNGKey(0)
    kx, kg, k1, k2, k3, k4 = jax.random.split(key, 6)

    x = jax.random.normal(kx, (num_nodes, embed_size), dtype=jnp.float32)
    # Ensure every graph has at least one node (common GNN batching case).
    gather_idx = jnp.concatenate([
        jnp.arange(num_graph, dtype=jnp.int32),
        jax.random.randint(kg, (num_nodes - num_graph,), 0, num_graph,
                           dtype=jnp.int32),
    ])

    # Deterministic uniform(-0.1, 0.1) init, as in the PyTorch __init__.
    w1 = jax.random.uniform(k1, (embed_size, filters[0]), jnp.float32,
                            init_a, init_b)
    b1 = jax.random.uniform(k2, (filters[0],), jnp.float32, init_a, init_b)
    w2 = jax.random.uniform(k3, (filters[0], filters[1]), jnp.float32,
                            init_a, init_b)
    b2 = jax.random.uniform(k4, (filters[1],), jnp.float32, init_a, init_b)
    params = (w1, b1, w2, b2)

    ref = _reference(x, gather_idx, num_graph, params)

    # f32 path: bit-close to the reference.
    out_f32 = jax.block_until_ready(
        neck_forward(x, gather_idx, num_graph, params, use_bf16=False))
    assert out_f32.shape == (num_graph, filters[1])
    assert jnp.allclose(out_f32, ref, atol=1e-5, rtol=1e-5)

    # Default path: bf16 MXU operands (f32 accumulation) + an explicit shard
    # axis to exercise the per-shard slab combine.
    out_bf16 = jax.block_until_ready(
        neck_forward(x, gather_idx, num_graph, params, num_shards=2))
    assert out_bf16.shape == (num_graph, filters[1])
    assert jnp.allclose(out_bf16, ref, atol=1e-2, rtol=1e-2)

    print("KERNEL_OK")
</pallas_src>

<mosaic_0001>
module attributes {stable_mosaic.version = 11 : i64} {
  func.func @_neck_kernel(%arg0: i32, %arg1: i32, %arg2: memref<1xi32, #tpu.memory_space<smem>>, %arg3: memref<1xi32, #tpu.memory_space<smem>>, %arg4: memref<40x32xf32, #tpu.memory_space<vmem>>, %arg5: memref<40x1xi32, #tpu.memory_space<vmem>>, %arg6: memref<32x64xf32, #tpu.memory_space<vmem>>, %arg7: memref<1x64xf32, #tpu.memory_space<vmem>>, %arg8: memref<64x128xf32, #tpu.memory_space<vmem>>, %arg9: memref<1x128xf32, #tpu.memory_space<vmem>>, %arg10: memref<1x16x128xf32, #tpu.memory_space<vmem>>) attributes {dimension_semantics = [#tpu.dimension_semantics<parallel>, #tpu.dimension_semantics<arbitrary>], iteration_bounds = array<i64: 1, 1>, scalar_prefetch = 2 : i64, scratch_operands = 0 : i64, tpu.core_type = #tpu.core_type<tc>, window_params = [{transform_indices = @transform_0, window_bounds = array<i64: 40, 32>}, {transform_indices = @transform_1, window_bounds = array<i64: 40, 1>}, {pipeline_mode = #tpu.pipeline_mode<synchronous>, transform_indices = @transform_2, window_bounds = array<i64: 32, 64>}, {pipeline_mode = #tpu.pipeline_mode<synchronous>, transform_indices = @transform_3, window_bounds = array<i64: 1, 64>}, {pipeline_mode = #tpu.pipeline_mode<synchronous>, transform_indices = @transform_4, window_bounds = array<i64: 64, 128>}, {pipeline_mode = #tpu.pipeline_mode<synchronous>, transform_indices = @transform_5, window_bounds = array<i64: 1, 128>}, {transform_indices = @transform_6, window_bounds = array<i64: 1, 16, 128>}]} {
    %c1_i32 = arith.constant 1 : i32
    %0 = arith.muli %arg0, %c1_i32 : i32
    %1 = arith.addi %0, %arg1 : i32
    %c0_i32 = arith.constant 0 : i32
    %2 = arith.cmpi eq, %arg1, %c0_i32 : i32
    %3 = arith.extui %2 : i1 to i32
    %c0_i32_0 = arith.constant 0 : i32
    %4 = arith.cmpi ne, %3, %c0_i32_0 : i32
    scf.if %4 {
      %cst = arith.constant 0.000000e+00 : f32
      %12 = vector.broadcast %cst : f32 to vector<16x128xf32>
      %c0 = arith.constant 0 : index
      %c0_2 = arith.constant 0 : index
      %c0_3 = arith.constant 0 : index
      %13 = vector.load %arg10[%c0, %c0_2, %c0_3] : memref<1x16x128xf32, #tpu.memory_space<vmem>>, vector<1x16x128xf32>
      %14 = vector.shape_cast %13 : vector<1x16x128xf32> to vector<16x128xf32>
      %15 = vector.shape_cast %12 : vector<16x128xf32> to vector<1x16x128xf32>
      tpu.vector_store %arg10[%c0, %c0_2, %c0_3], %15 {strides = array<i32>} : memref<1x16x128xf32, #tpu.memory_space<vmem>>, vector<1x16x128xf32>,
    } else {
    }
    %5 = arith.index_cast %1 : i32 to index
    %6 = memref.load %arg2[%5] : memref<1xi32, #tpu.memory_space<smem>>
    %7 = arith.index_cast %1 : i32 to index
    %8 = memref.load %arg3[%7] : memref<1xi32, #tpu.memory_space<smem>>
    %9 = arith.cmpi slt, %6, %8 : i32
    %10 = arith.extui %9 : i1 to i32
    %c0_i32_1 = arith.constant 0 : i32
    %11 = arith.cmpi ne, %10, %c0_i32_1 : i32
    scf.if %11 {
      %c0 = arith.constant 0 : index
      %c0_2 = arith.constant 0 : index
      %12 = vector.load %arg4[%c0, %c0_2] : memref<40x32xf32, #tpu.memory_space<vmem>>, vector<40x32xf32>
      %c0_3 = arith.constant 0 : index
      %c0_4 = arith.constant 0 : index
      %13 = vector.load %arg6[%c0_3, %c0_4] : memref<32x64xf32, #tpu.memory_space<vmem>>, vector<32x64xf32>
      %cst = arith.constant dense<0.000000e+00> : vector<40x64xf32>
      %14 = tpu.matmul %12, %13, %cst {dimension_numbers = #tpu.dot_dimension_numbers<[1], [0], [0], [1], [0, 0, 1, 1], [], []>} : vector<40x32xf32>, vector<32x64xf32>, vector<40x64xf32> -> vector<40x64xf32>
      %c0_5 = arith.constant 0 : index
      %c0_6 = arith.constant 0 : index
      %15 = vector.load %arg7[%c0_5, %c0_6] : memref<1x64xf32, #tpu.memory_space<vmem>>, vector<1x64xf32>
      %16 = vector.broadcast %15 : vector<1x64xf32> to vector<40x64xf32>
      %17 = arith.addf %14, %16 : vector<40x64xf32>
      %cst_7 = arith.constant 0.000000e+00 : f32
      %18 = vector.broadcast %cst_7 : f32 to vector<40x64xf32>
      %19 = arith.maximumf %17, %18 : vector<40x64xf32>
      %c0_8 = arith.constant 0 : index
      %c0_9 = arith.constant 0 : index
      %20 = vector.load %arg8[%c0_8, %c0_9] : memref<64x128xf32, #tpu.memory_space<vmem>>, vector<64x128xf32>
      %cst_10 = arith.constant dense<0.000000e+00> : vector<40x128xf32>
      %21 = tpu.matmul %19, %20, %cst_10 {dimension_numbers = #tpu.dot_dimension_numbers<[1], [0], [0], [1], [0, 0, 1, 1], [], []>} : vector<40x64xf32>, vector<64x128xf32>, vector<40x128xf32> -> vector<40x128xf32>
      %c0_11 = arith.constant 0 : index
      %c0_12 = arith.constant 0 : index
      %22 = vector.load %arg9[%c0_11, %c0_12] : memref<1x128xf32, #tpu.memory_space<vmem>>, vector<1x128xf32>
      %23 = vector.broadcast %22 : vector<1x128xf32> to vector<40x128xf32>
      %24 = arith.addf %21, %23 : vector<40x128xf32>
      %cst_13 = arith.constant 0.000000e+00 : f32
      %25 = vector.broadcast %cst_13 : f32 to vector<40x128xf32>
      %26 = arith.maximumf %24, %25 : vector<40x128xf32>
      %c0_14 = arith.constant 0 : index
      %c0_15 = arith.constant 0 : index
      %27 = vector.load %arg5[%c0_14, %c0_15] : memref<40x1xi32, #tpu.memory_space<vmem>>, vector<40x1xi32>
      %c0_i32_16 = arith.constant 0 : i32
      %28 = arith.subi %8, %6 : i32
      %29 = arith.addi %6, %28 : i32
      %c1_i32_17 = arith.constant 1 : i32
      scf.for %arg11 = %6 to %29 step %c1_i32_17  : i32 {
        %c8_i32 = arith.constant 8 : i32
        %30 = arith.muli %arg11, %c8_i32 : i32
        %31 = tpu.assume_multiple %30, 8 : i32
        %c0_i32_18 = arith.constant 0 : i32
        %32 = arith.addi %31, %c0_i32_18 : i32
        %33 = vector.broadcast %32 : i32 to vector<40x1xi32>
        %34 = arith.cmpi eq, %27, %33 : vector<40x1xi32>
        %cst_19 = arith.constant 0.000000e+00 : f32
        %35 = vector.shape_cast %34 : vector<40x1xi1> to vector<40x1xi1>
        %36 = vector.broadcast %35 : vector<40x1xi1> to vector<40x128xi1>
        %37 = vector.broadcast %cst_19 : f32 to vector<40x128xf32>
        %38 = arith.select %36, %26, %37 : vector<40x128xi1>, vector<40x128xf32>
        %cst_20 = arith.constant dense<0xFF800000> : vector<128xf32>
        %39 = vector.multi_reduction <maximumf>, %38, %cst_20 [0] : vector<40x128xf32> to vector<128xf32>
        %40 = vector.shape_cast %39 : vector<128xf32> to vector<1x128xf32>
        %c1_i32_21 = arith.constant 1 : i32
        %41 = arith.addi %31, %c1_i32_21 : i32
        %42 = vector.broadcast %41 : i32 to vector<40x1xi32>
        %43 = arith.cmpi eq, %27, %42 : vector<40x1xi32>
        %cst_22 = arith.constant 0.000000e+00 : f32
        %44 = vector.shape_cast %43 : vector<40x1xi1> to vector<40x1xi1>
        %45 = vector.broadcast %44 : vector<40x1xi1> to vector<40x128xi1>
        %46 = vector.broadcast %cst_22 : f32 to vector<40x128xf32>
        %47 = arith.select %45, %26, %46 : vector<40x128xi1>, vector<40x128xf32>
        %cst_23 = arith.constant dense<0xFF800000> : vector<128xf32>
        %48 = vector.multi_reduction <maximumf>, %47, %cst_23 [0] : vector<40x128xf32> to vector<128xf32>
        %49 = vector.shape_cast %48 : vector<128xf32> to vector<1x128xf32>
        %c2_i32 = arith.constant 2 : i32
        %50 = arith.addi %31, %c2_i32 : i32
        %51 = vector.broadcast %50 : i32 to vector<40x1xi32>
        %52 = arith.cmpi eq, %27, %51 : vector<40x1xi32>
        %cst_24 = arith.constant 0.000000e+00 : f32
        %53 = vector.shape_cast %52 : vector<40x1xi1> to vector<40x1xi1>
        %54 = vector.broadcast %53 : vector<40x1xi1> to vector<40x128xi1>
        %55 = vector.broadcast %cst_24 : f32 to vector<40x128xf32>
        %56 = arith.select %54, %26, %55 : vector<40x128xi1>, vector<40x128xf32>
        %cst_25 = arith.constant dense<0xFF800000> : vector<128xf32>
        %57 = vector.multi_reduction <maximumf>, %56, %cst_25 [0] : vector<40x128xf32> to vector<128xf32>
        %58 = vector.shape_cast %57 : vector<128xf32> to vector<1x128xf32>
        %c3_i32 = arith.constant 3 : i32
        %59 = arith.addi %31, %c3_i32 : i32
        %60 = vector.broadcast %59 : i32 to vector<40x1xi32>
        %61 = arith.cmpi eq, %27, %60 : vector<40x1xi32>
        %cst_26 = arith.constant 0.000000e+00 : f32
        %62 = vector.shape_cast %61 : vector<40x1xi1> to vector<40x1xi1>
        %63 = vector.broadcast %62 : vector<40x1xi1> to vector<40x128xi1>
        %64 = vector.broadcast %cst_26 : f32 to vector<40x128xf32>
        %65 = arith.select %63, %26, %64 : vector<40x128xi1>, vector<40x128xf32>
        %cst_27 = arith.constant dense<0xFF800000> : vector<128xf32>
        %66 = vector.multi_reduction <maximumf>, %65, %cst_27 [0] : vector<40x128xf32> to vector<128xf32>
        %67 = vector.shape_cast %66 : vector<128xf32> to vector<1x128xf32>
        %c4_i32 = arith.constant 4 : i32
        %68 = arith.addi %31, %c4_i32 : i32
        %69 = vector.broadcast %68 : i32 to vector<40x1xi32>
        %70 = arith.cmpi eq, %27, %69 : vector<40x1xi32>
        %cst_28 = arith.constant 0.000000e+00 : f32
        %71 = vector.shape_cast %70 : vector<40x1xi1> to vector<40x1xi1>
        %72 = vector.broadcast %71 : vector<40x1xi1> to vector<40x128xi1>
        %73 = vector.broadcast %cst_28 : f32 to vector<40x128xf32>
        %74 = arith.select %72, %26, %73 : vector<40x128xi1>, vector<40x128xf32>
        %cst_29 = arith.constant dense<0xFF800000> : vector<128xf32>
        %75 = vector.multi_reduction <maximumf>, %74, %cst_29 [0] : vector<40x128xf32> to vector<128xf32>
        %76 = vector.shape_cast %75 : vector<128xf32> to vector<1x128xf32>
        %c5_i32 = arith.constant 5 : i32
        %77 = arith.addi %31, %c5_i32 : i32
        %78 = vector.broadcast %77 : i32 to vector<40x1xi32>
        %79 = arith.cmpi eq, %27, %78 : vector<40x1xi32>
        %cst_30 = arith.constant 0.000000e+00 : f32
        %80 = vector.shape_cast %79 : vector<40x1xi1> to vector<40x1xi1>
        %81 = vector.broadcast %80 : vector<40x1xi1> to vector<40x128xi1>
        %82 = vector.broadcast %cst_30 : f32 to vector<40x128xf32>
        %83 = arith.select %81, %26, %82 : vector<40x128xi1>, vector<40x128xf32>
        %cst_31 = arith.constant dense<0xFF800000> : vector<128xf32>
        %84 = vector.multi_reduction <maximumf>, %83, %cst_31 [0] : vector<40x128xf32> to vector<128xf32>
        %85 = vector.shape_cast %84 : vector<128xf32> to vector<1x128xf32>
        %c6_i32 = arith.constant 6 : i32
        %86 = arith.addi %31, %c6_i32 : i32
        %87 = vector.broadcast %86 : i32 to vector<40x1xi32>
        %88 = arith.cmpi eq, %27, %87 : vector<40x1xi32>
        %cst_32 = arith.constant 0.000000e+00 : f32
        %89 = vector.shape_cast %88 : vector<40x1xi1> to vector<40x1xi1>
        %90 = vector.broadcast %89 : vector<40x1xi1> to vector<40x128xi1>
        %91 = vector.broadcast %cst_32 : f32 to vector<40x128xf32>
        %92 = arith.select %90, %26, %91 : vector<40x128xi1>, vector<40x128xf32>
        %cst_33 = arith.constant dense<0xFF800000> : vector<128xf32>
        %93 = vector.multi_reduction <maximumf>, %92, %cst_33 [0] : vector<40x128xf32> to vector<128xf32>
        %94 = vector.shape_cast %93 : vector<128xf32> to vector<1x128xf32>
        %c7_i32 = arith.constant 7 : i32
        %95 = arith.addi %31, %c7_i32 : i32
        %96 = vector.broadcast %95 : i32 to vector<40x1xi32>
        %97 = arith.cmpi eq, %27, %96 : vector<40x1xi32>
        %cst_34 = arith.constant 0.000000e+00 : f32
        %98 = vector.shape_cast %97 : vector<40x1xi1> to vector<40x1xi1>
        %99 = vector.broadcast %98 : vector<40x1xi1> to vector<40x128xi1>
        %100 = vector.broadcast %cst_34 : f32 to vector<40x128xf32>
        %101 = arith.select %99, %26, %100 : vector<40x128xi1>, vector<40x128xf32>
        %cst_35 = arith.constant dense<0xFF800000> : vector<128xf32>
        %102 = vector.multi_reduction <maximumf>, %101, %cst_35 [0] : vector<40x128xf32> to vector<128xf32>
        %103 = vector.shape_cast %102 : vector<128xf32> to vector<1x128xf32>
        %104 = tpu.concatenate %40, %49, %58, %67, %76, %85, %94, %103 in 0 : vector<1x128xf32>, vector<1x128xf32>, vector<1x128xf32>, vector<1x128xf32>, vector<1x128xf32>, vector<1x128xf32>, vector<1x128xf32>, vector<1x128xf32> -> vector<8x128xf32>
        %c0_36 = arith.constant 0 : index
        %105 = arith.index_cast %31 : i32 to index
        %c0_37 = arith.constant 0 : index
        %106 = vector.load %arg10[%c0_36, %105, %c0_37] : memref<1x16x128xf32, #tpu.memory_space<vmem>>, vector<1x8x128xf32>
        %107 = vector.shape_cast %106 : vector<1x8x128xf32> to vector<8x128xf32>
        %108 = arith.maximumf %107, %104 : vector<8x128xf32>
        %c0_38 = arith.constant 0 : index
        %109 = arith.index_cast %31 : i32 to index
        %c0_39 = arith.constant 0 : index
        %110 = vector.load %arg10[%c0_38, %109, %c0_39] : memref<1x16x128xf32, #tpu.memory_space<vmem>>, vector<1x8x128xf32>
        %111 = vector.shape_cast %110 : vector<1x8x128xf32> to vector<8x128xf32>
        %112 = vector.shape_cast %108 : vector<8x128xf32> to vector<1x8x128xf32>
        tpu.vector_store %arg10[%c0_38, %109, %c0_39], %112 {strides = array<i32>} : memref<1x16x128xf32, #tpu.memory_space<vmem>>, vector<1x8x128xf32>,
      }
    } else {
    }
    return
  }
  func.func @transform_0(%arg0: i32, %arg1: i32, %arg2: memref<1xi32, #tpu.memory_space<smem>>, %arg3: memref<1xi32, #tpu.memory_space<smem>>) -> (i32, i32) {
    %c1_i32 = arith.constant 1 : i32
    %0 = arith.muli %arg0, %c1_i32 : i32
    %1 = arith.addi %0, %arg1 : i32
    %c0_i32 = arith.constant 0 : i32
    %c0_i32_0 = arith.constant 0 : i32
    return %1, %c0_i32 : i32, i32
  }
  func.func @transform_1(%arg0: i32, %arg1: i32, %arg2: memref<1xi32, #tpu.memory_space<smem>>, %arg3: memref<1xi32, #tpu.memory_space<smem>>) -> (i32, i32) {
    %c1_i32 = arith.constant 1 : i32
    %0 = arith.muli %arg0, %c1_i32 : i32
    %1 = arith.addi %0, %arg1 : i32
    %c0_i32 = arith.constant 0 : i32
    %c0_i32_0 = arith.constant 0 : i32
    return %1, %c0_i32 : i32, i32
  }
  func.func @transform_2(%arg0: i32, %arg1: i32, %arg2: memref<1xi32, #tpu.memory_space<smem>>, %arg3: memref<1xi32, #tpu.memory_space<smem>>) -> (i32, i32) {
    %c0_i32 = arith.constant 0 : i32
    %c0_i32_0 = arith.constant 0 : i32
    %c0_i32_1 = arith.constant 0 : i32
    return %c0_i32, %c0_i32_0 : i32, i32
  }
  func.func @transform_3(%arg0: i32, %arg1: i32, %arg2: memref<1xi32, #tpu.memory_space<smem>>, %arg3: memref<1xi32, #tpu.memory_space<smem>>) -> (i32, i32) {
    %c0_i32 = arith.constant 0 : i32
    %c0_i32_0 = arith.constant 0 : i32
    %c0_i32_1 = arith.constant 0 : i32
    return %c0_i32, %c0_i32_0 : i32, i32
  }
  func.func @transform_4(%arg0: i32, %arg1: i32, %arg2: memref<1xi32, #tpu.memory_space<smem>>, %arg3: memref<1xi32, #tpu.memory_space<smem>>) -> (i32, i32) {
    %c0_i32 = arith.constant 0 : i32
    %c0_i32_0 = arith.constant 0 : i32
    %c0_i32_1 = arith.constant 0 : i32
    return %c0_i32, %c0_i32_0 : i32, i32
  }
  func.func @transform_5(%arg0: i32, %arg1: i32, %arg2: memref<1xi32, #tpu.memory_space<smem>>, %arg3: memref<1xi32, #tpu.memory_space<smem>>) -> (i32, i32) {
    %c0_i32 = arith.constant 0 : i32
    %c0_i32_0 = arith.constant 0 : i32
    %c0_i32_1 = arith.constant 0 : i32
    return %c0_i32, %c0_i32_0 : i32, i32
  }
  func.func @transform_6(%arg0: i32, %arg1: i32, %arg2: memref<1xi32, #tpu.memory_space<smem>>, %arg3: memref<1xi32, #tpu.memory_space<smem>>) -> (i32, i32, i32) {
    %c0_i32 = arith.constant 0 : i32
    %c0_i32_0 = arith.constant 0 : i32
    %c0_i32_1 = arith.constant 0 : i32
    return %arg0, %c0_i32, %c0_i32_0 : i32, i32, i32
  }
}

</mosaic_0001>

<bundles_post_ra>
// kernel: tpu_custom_call.1
= control target key start
LH: loop header
LB: loop body
LE: loop exit
PB: predicated region body
PF: predicated region fallthrough
CT: control target
= control target key end

     0   :  { %15 = vsyncpa [#allocation6], 0  ;;  %v944_v0 = vmov 0.0   ;;  %s1311_s0 = inlined_call_operand.<no memory space> [shape: s32[1], index: 0, kind: input, shape index: {}]   ;;  %s1312_s1 = inlined_call_operand.<no memory space> [shape: s32[1], index: 1, kind: input, shape index: {}]   ;;  %s1313_s2 = inlined_call_operand.vmem [shape: f32[40,32], index: 2, kind: input, shape index: {}]   ;;  %s1314_s3 = inlined_call_operand.vmem [shape: s32[40,1], index: 3, kind: input, shape index: {}]   ;;  %s1315_s4 = inlined_call_operand.vmem [shape: f32[32,64], index: 4, kind: input, shape index: {}]   ;;  %s1316_s5 = inlined_call_operand.vmem [shape: f32[1,64], index: 5, kind: input, shape index: {}]   ;;  %s1317_s6 = inlined_call_operand.vmem [shape: f32[64,128], index: 6, kind: input, shape index: {}]   ;;  %s1318_s7 = inlined_call_operand.vmem [shape: f32[1,128], index: 7, kind: input, shape index: {}]   ;;  %s1319_s8 = inlined_call_operand.hbm [shape: f32[1,16,128], index: 8, kind: output, shape index: {}]  }
   0x1   :  { %77 = vst [vmem:[#allocation5] sm:$0xff] %v944_v0  ;;  %78 = vst [vmem:[#allocation5 + $0x8] sm:$0xff] %v944_v0  ;;  %p778_p0 = scmp.ge.s32.totalorder %s1311_s0, %s1312_s1 }
   0x2   :  { %v90_v1 = vld [vmem:[%s1315_s4] sm:$0xff] (!%p778_p0)  ;;  %v91_v2 = vld [vmem:[%s1315_s4 + $0x8] sm:$0xff] (!%p778_p0)  ;;  %v92_v3 = vld [vmem:[%s1315_s4 + $0x10] sm:$0xff] (!%p778_p0)  ;;  %v945_v4 = vmov (!%p778_p0), 0.0|0.0   ;;  %vm946_vm0 = vmmov (!%p778_p0), 0   ;;  %v947_v7 = vmov (!%p778_p0), 0.0  }
   0x3   :  { %84 = sbr.rel (%p778_p0) target bundleno = 689 (0x2b1), region = 33  ;;  %868 = vmatprep.subr.bf16.mxu0 (!%p778_p0), %v945_v4  ;;  %v869_v5 = vpack.c.bf16 (!%p778_p0), %v91_v2, %v90_v1  ;;  %v93_v6 = vld [vmem:[%s1315_s4 + $0x18] sm:$0xff] (!%p778_p0)  ;;  %822 = vmatprep.mubr.msk.f32.mxu0 (!%p778_p0), %vm946_vm0, %v947_v7  ;;  %v212_v9 = vld [vmem:[%s1317_s6] sm:$0xff] (!%p778_p0)  ;;  %v213_v10 = vld [vmem:[%s1317_s6 + $0x8] sm:$0xff] (!%p778_p0)  ;;  %vm101_vm1 = vcmask (!%p778_p0), 261120   ;;  %vm227_vm2 = vcmask (!%p778_p0), 523264  }
   0x4   :  { %886 = vmatprep.subr.bf16.mxu1 (!%p778_p0), %v945_v4  ;;  %856 = vmatprep.mubr.msk.f32.mxu1 (!%p778_p0), %vm946_vm0, %v947_v7  ;;  %v872_v8 = vpack.c.bf16 (!%p778_p0), %v93_v6, %v92_v3  ;;  %v875_v11 = vpack.c.bf16 (!%p778_p0), %v213_v10, %v212_v9  ;;  %v214_v12 = vld [vmem:[%s1317_s6 + $0x10] sm:$0xff] (!%p778_p0)  ;;  %v215_v13 = vld [vmem:[%s1317_s6 + $0x18] sm:$0xff] (!%p778_p0)  ;;  %v85_v14 = vld [vmem:[%s1313_s2] sm:$0xff] (!%p778_p0) }
   0x5   :  { %870 = vmatpush3.bf16.msra.mxu0 (!%p778_p0), %v869_v5  ;;  %v878_v15 = vpack.c.bf16 (!%p778_p0), %v215_v13, %v214_v12  ;;  %v216_v16 = vld [vmem:[%s1317_s6 + $0x20] sm:$0xff] (!%p778_p0)  ;;  %v217_v17 = vld [vmem:[%s1317_s6 + $0x28] sm:$0xff] (!%p778_p0)  ;;  %v87_v20 = vld [vmem:[%s1313_s2 + $0x10] sm:$0xff] (!%p778_p0) }
   0x6   :  { %871 = vmatprep.subr.bf16.mxu0 (!%p778_p0), %v945_v4  ;;  %890 = vmatpush3.bf16.msra.mxu1 (!%p778_p0), %v875_v11  ;;  %v86_v18 = vld [vmem:[%s1313_s2 + $0x8] sm:$0xff] (!%p778_p0)  ;;  %v881_v19 = vpack.c.bf16 (!%p778_p0), %v217_v17, %v216_v16  ;;  %v88_v21 = vld [vmem:[%s1313_s2 + $0x18] sm:$0xff] (!%p778_p0)  ;;  %v89_v22 = vld [vmem:[%s1313_s2 + $0x20] sm:$0xff] (!%p778_p0) }
   0x7   :  { %887 = vmatprep.subr.bf16.mxu1 (!%p778_p0), %v945_v4  ;;  %v218_v23 = vld [vmem:[%s1317_s6 + $0x30] sm:$0xff] (!%p778_p0)  ;;  %v219_v24 = vld [vmem:[%s1317_s6 + $0x38] sm:$0xff] (!%p778_p0)  ;;  %v779_v26 = vld [vmem:[%s1316_s5] ss:$0 sm:$0xff] (!%p778_p0) }
   0x8   :  { %v884_v25 = vpack.c.bf16 (!%p778_p0), %v219_v24, %v218_v23  ;;  %v1097_v47 = vld [vmem:[%s1314_s3] sm:$0xff] (!%p778_p0)  ;;  %v1102_v48 = vld [vmem:[%s1314_s3 + $0x8] sm:$0xff] (!%p778_p0)  ;;  %v1107_v49 = vld [vmem:[%s1314_s3 + $0x10] sm:$0xff] (!%p778_p0) }
   0x9   :  { %873 = vmatpush3.bf16.msra.mxu0 (!%p778_p0), %v872_v8  ;;  %v1112_v50 = vld [vmem:[%s1314_s3 + $0x18] sm:$0xff] (!%p778_p0)  ;;  %v1117_v51 = vld [vmem:[%s1314_s3 + $0x20] sm:$0xff] (!%p778_p0) }
   0xa   :  { %874 = vmatprep.subr.bf16.mxu0 %v945_v4  ;;  %891 = vmatpush3.bf16.msra.mxu1 %v878_v15  ;;  %v785_v52 = vld [vmem:[%s1318_s7] ss:$0 sm:$0xff] }
   0xb   :  { %888 = vmatprep.subr.bf16.mxu1 %v945_v4 }
   0xc   :  { %823 = vmatmul.mubr.msk.f32.vlgmr.msra.gmra.mrb[0].mxu0 %vm101_vm1, %v85_v14 }
   0xd   :  { %825 = vmatprep.mubr.msk.f32.mxu0 %vm946_vm0, %v947_v7  ;;  %876 = vmatpush3.bf16.msra.mxu0 %v875_v11 }
   0xe   :  { %877 = vmatprep.subr.bf16.mxu0 %v945_v4  ;;  %892 = vmatpush3.bf16.msra.mxu1 %v881_v19 }
   0xf   :  { %889 = vmatprep.subr.bf16.mxu1 %v945_v4 }
  0x10   :  { %826 = vmatmul.mubr.msk.f32.gmra.mrb[2].mxu0 %vm101_vm1, %v86_v18 }
  0x11   :  { %828 = vmatprep.mubr.msk.f32.mxu0 %vm946_vm0, %v947_v7  ;;  %879 = vmatpush3.bf16.msra.mxu0 %v878_v15 }
  0x12   :  { %880 = vmatprep.subr.bf16.mxu0 %v945_v4  ;;  %893 = vmatpush3.bf16.msra.mxu1 %v884_v25 }
  0x14   :  { %829 = vmatmul.mubr.msk.f32.gmra.mrb[4].mxu0 %vm101_vm1, %v87_v20 }
  0x15   :  { %831 = vmatprep.mubr.msk.f32.mxu0 %vm946_vm0, %v947_v7  ;;  %882 = vmatpush3.bf16.msra.mxu0 %v881_v19 }
  0x16   :  { %883 = vmatprep.subr.bf16.mxu0 %v945_v4 }
  0x18   :  { %832 = vmatmul.mubr.msk.f32.gmra.mrb[6].mxu0 %vm101_vm1, %v88_v21 }
  0x19   :  { %834 = vmatprep.mubr.msk.f32.mxu0 %vm946_vm0, %v947_v7  ;;  %885 = vmatpush3.bf16.msra.mxu0 %v884_v25 }
  0x1c   :  { %835 = vmatmul.mubr.msk.f32.gmra.mrb[8].mxu0 %vm101_vm1, %v89_v22 }
  0x1d   :  { %853 = vmatprep.mubr.msk.f32.mxu0 %vm946_vm0, %v947_v7 }
  0xdf   :  { %v183_v27 = vpop.f32.mrb[0].mxu0 }
  0xe0   :  { %v184_v28 = vadd.f32 %v779_v26, %v183_v27  ;;  %v824_v29 = vpop.f32.mrb[1].mxu0 }
  0xe2   :  { %v207_v30 = vmax.f32 %v184_v28, 0.0 }
  0xe3   :  { %v188_v31 = vpop.f32.mrb[2].mxu0 }
  0xe4   :  { %v189_v32 = vadd.f32 %v779_v26, %v188_v31  ;;  %v827_v33 = vpop.f32.mrb[3].mxu0  ;;  %854 = vmatmul.mubr.msk.f32.vlgmr.msra.gmra.mrb[10].mxu0 %vm227_vm2, %v207_v30 }
  0xe6   :  { %v208_v34 = vmax.f32 %v189_v32, 0.0 }
  0xe7   :  { %v193_v35 = vpop.f32.mrb[4].mxu0 }
  0xe8   :  { %v194_v36 = vadd.f32 %v779_v26, %v193_v35  ;;  %v830_v37 = vpop.f32.mrb[5].mxu0  ;;  %857 = vmatmul.mubr.msk.f32.vlgmr.msra.gmra.mrb[0].mxu1 %vm227_vm2, %v208_v34 }
  0xe9   :  { %859 = vmatprep.mubr.msk.f32.mxu1 %vm946_vm0, %v947_v7 }
  0xea   :  { %v209_v38 = vmax.f32 %v194_v36, 0.0 }
  0xeb   :  { %v198_v39 = vpop.f32.mrb[6].mxu0 }
  0xec   :  { %v199_v40 = vadd.f32 %v779_v26, %v198_v39  ;;  %v833_v41 = vpop.f32.mrb[7].mxu0  ;;  %860 = vmatmul.mubr.msk.f32.gmra.mrb[2].mxu1 %vm227_vm2, %v209_v38 }
  0xed   :  { %862 = vmatprep.mubr.msk.f32.mxu1 %vm946_vm0, %v947_v7 }
  0xee   :  { %v210_v42 = vmax.f32 %v199_v40, 0.0 }
  0xef   :  { %v203_v43 = vpop.f32.mrb[8].mxu0 }
  0xf0   :  { %v204_v44 = vadd.f32 %v779_v26, %v203_v43  ;;  %v836_v45 = vpop.f32.mrb[9].mxu0  ;;  %863 = vmatmul.mubr.msk.f32.gmra.mrb[4].mxu1 %vm227_vm2, %v210_v42 }
  0xf1   :  { %865 = vmatprep.mubr.msk.f32.mxu1 %vm946_vm0, %v947_v7 }
  0xf2   :  { %v211_v46 = vmax.f32 %v204_v44, 0.0 }
  0xf4   :  { %866 = vmatmul.mubr.msk.f32.gmra.mrb[6].mxu1 %vm227_vm2, %v211_v46 }
 0x1b7   :  { %v309_v53 = vpop.f32.mrb[10].mxu0 }
 0x1b8   :  { %v310_v54 = vadd.f32 %v785_v52, %v309_v53  ;;  %v855_v55 = vpop.f32.mrb[11].mxu0 }
 0x1ba   :  { %v1122_v56 = vmax.f32 %v310_v54, 0.0 }
 0x1bb   :  { %v314_v57 = vpop.f32.mrb[0].mxu1 }
 0x1bc   :  { %v315_v58 = vadd.f32 %v785_v52, %v314_v57  ;;  %v858_v59 = vpop.f32.mrb[1].mxu1 }
 0x1be   :  { %v1124_v60 = vmax.f32 %v315_v58, 0.0 }
 0x1bf   :  { %v319_v61 = vpop.f32.mrb[2].mxu1 }
 0x1c0   :  { %v320_v62 = vadd.f32 %v785_v52, %v319_v61  ;;  %v861_v63 = vpop.f32.mrb[3].mxu1 }
 0x1c2   :  { %v1126_v0 = vmax.f32 %v320_v62, 0.0 }
 0x1c3   :  { %v324_v1 = vpop.f32.mrb[4].mxu1 }
 0x1c4   :  { %v325_v2 = vadd.f32 %v785_v52, %v324_v1  ;;  %v864_v3 = vpop.f32.mrb[5].mxu1  ;;  %775 = sbr.rel (%p778_p0) target bundleno = 689 (0x2b1), region = 60 }
 0x1c6   :  { %v1128_v4 = vmax.f32 %v325_v2, 0.0 }
 0x1c7   :  { %v329_v5 = vpop.f32.mrb[6].mxu1 }
 0x1c8   :  { %v330_v6 = vadd.f32 %v785_v52, %v329_v5  ;;  %v867_v7 = vpop.f32.mrb[7].mxu1 }
 0x1ca   :  { %v1130_v8 = vmax.f32 %v330_v6, 0.0 }
 0x1cb LB: > { %v948_v9 = vmov 0   ;;  %s1150_s16 = sshll.u32 %s942_s0, 3  ;;  %s346_s0 = sadd.s32 1, %s942_s0   ;;  %s942_s0 = sphi %s1311_s0, %s346_s0  }
 0x1cc   : > { %911 = vset.pattern.permute.xlu1 %v948_v9  ;;  %910 = vset.pattern.permute.xlu0 %v948_v9  ;;  %v350_v10 = vstv %s1150_s16  ;;  %s396_s17 = sadd.s32 1, %s1150_s16  ;;  %s443_s18 = sadd.s32 2, %s1150_s16 }
 0x1cd   : > { %vm353_vm3 = vcmp.eq.s32.totalorder %v1107_v49, %v350_v10  ;;  %vm351_vm4 = vcmp.eq.s32.totalorder %v1097_v47, %v350_v10  ;;  %vm354_vm5 = vcmp.eq.s32.totalorder %v1112_v50, %v350_v10  ;;  %vm352_vm6 = vcmp.eq.s32.totalorder %v1102_v48, %v350_v10  ;;  %s490_s19 = sadd.s32 3, %s1150_s16  ;;  %s537_s20 = sadd.s32 4, %s1150_s16 }
 0x1ce   : > { %v358_v11 = vsel %vm353_vm3, 1, %v948_v9  ;;  %v356_v12 = vsel %vm351_vm4, 1, %v948_v9  ;;  %v397_v13 = vstv %s396_s17  ;;  %v359_v14 = vsel %vm354_vm5, 1, %v948_v9  ;;  %s584_s21 = sadd.s32 5, %s1150_s16  ;;  %s631_s22 = sadd.s32 6, %s1150_s16 }
 0x1cf   : > { %368 = vperm.xlu1 %911, %v358_v11   ;;  %362 = vperm.xlu0 %910, %v356_v12   ;;  %v357_v15 = vsel %vm352_vm6, 1, %v948_v9  ;;  %vm398_vm7 = vcmp.eq.s32.totalorder %v1097_v47, %v397_v13  ;;  %vm355_vm8 = vcmp.eq.s32.totalorder %v1117_v51, %v350_v10  ;;  %vm400_vm9 = vcmp.eq.s32.totalorder %v1107_v49, %v397_v13  ;;  %s678_s23 = sadd.s32 7, %s1150_s16  ;;  %s739_s24 = scalar_lea.vmem [#allocation5], %s1150_s16 }
 0x1d0   : > { %v403_v16 = vsel %vm398_vm7, 1, %v948_v9  ;;  %v360_v17 = vsel %vm355_vm8, 1, %v948_v9  ;;  %vm399_vm10 = vcmp.eq.s32.totalorder %v1102_v48, %v397_v13  ;;  %v405_v18 = vsel %vm400_vm9, 1, %v948_v9  ;;  %p345_p1 = scmp.ge.s32.totalorder %s346_s0, %s1312_s1 }
 0x1d1   : > { %v404_v19 = vsel %vm399_vm10, 1, %v948_v9  ;;  %vm402_vm11 = vcmp.eq.s32.totalorder %v1117_v51, %v397_v13  ;;  %vm401_vm12 = vcmp.eq.s32.totalorder %v1112_v50, %v397_v13  ;;  %v444_v20 = vstv %s443_s18 }
 0x1d2   : > { %v407_v21 = vsel %vm402_vm11, 1, %v948_v9  ;;  %v406_v22 = vsel %vm401_vm12, 1, %v948_v9  ;;  %vm446_vm13 = vcmp.eq.s32.totalorder %v1102_v48, %v444_v20  ;;  %vm445_vm14 = vcmp.eq.s32.totalorder %v1097_v47, %v444_v20 }
 0x1d3   : > { %371 = vperm.xlu1 %911, %v359_v14   ;;  %365 = vperm.xlu0 %910, %v357_v15   ;;  %v451_v23 = vsel %vm446_vm13, 1, %v948_v9  ;;  %v450_v24 = vsel %vm445_vm14, 1, %v948_v9  ;;  %vm448_vm15 = vcmp.eq.s32.totalorder %v1112_v50, %v444_v20  ;;  %vm447_vm0 = vcmp.eq.s32.totalorder %v1107_v49, %v444_v20 }
 0x1d4   : > { %v491_v25 = vstv %s490_s19  ;;  %v453_v26 = vsel %vm448_vm15, 1, %v948_v9  ;;  %v452_v27 = vsel %vm447_vm0, 1, %v948_v9  ;;  %vm449_vm2 = vcmp.eq.s32.totalorder %v1117_v51, %v444_v20 }
 0x1d5   : > { %vm492_vm1 = vcmp.eq.s32.totalorder %v1097_v47, %v491_v25  ;;  %v454_v29 = vsel %vm449_vm2, 1, %v948_v9  ;;  %vm496_vm3 = vcmp.eq.s32.totalorder %v1117_v51, %v491_v25  ;;  %vm493_vm4 = vcmp.eq.s32.totalorder %v1102_v48, %v491_v25 }
 0x1d6   : > { %v497_v28 = vsel %vm492_vm1, 1, %v948_v9  ;;  %v538_v30 = vstv %s537_s20  ;;  %v501_v31 = vsel %vm496_vm3, 1, %v948_v9  ;;  %v498_v32 = vsel %vm493_vm4, 1, %v948_v9 }
 0x1d7   : > { %409 = vperm.xlu1 %911, %v403_v16   ;;  %374 = vperm.xlu0 %910, %v360_v17   ;;  %vm543_vm5 = vcmp.eq.s32.totalorder %v1117_v51, %v538_v30  ;;  %vm539_vm6 = vcmp.eq.s32.totalorder %v1097_v47, %v538_v30  ;;  %vm495_vm7 = vcmp.eq.s32.totalorder %v1112_v50, %v491_v25  ;;  %v585_v35 = vstv %s584_s21 }
 0x1d8   : > { %v548_v33 = vsel %vm543_vm5, 1, %v948_v9  ;;  %v544_v34 = vsel %vm539_vm6, 1, %v948_v9  ;;  %vm494_vm8 = vcmp.eq.s32.totalorder %v1107_v49, %v491_v25  ;;  %v500_v36 = vsel %vm495_vm7, 1, %v948_v9 }
 0x1d9   : > { %v499_v37 = vsel %vm494_vm8, 1, %v948_v9  ;;  %vm590_vm9 = vcmp.eq.s32.totalorder %v1117_v51, %v585_v35  ;;  %vm586_vm10 = vcmp.eq.s32.totalorder %v1097_v47, %v585_v35  ;;  %vm541_vm11 = vcmp.eq.s32.totalorder %v1107_v49, %v538_v30 }
 0x1da   : > { %v595_v38 = vsel %vm590_vm9, 1, %v948_v9  ;;  %v591_v39 = vsel %vm586_vm10, 1, %v948_v9  ;;  %vm540_vm12 = vcmp.eq.s32.totalorder %v1102_v48, %v538_v30  ;;  %v632_v40 = vstv %s631_s22 }
 0x1db   : > { %415 = vperm.xlu1 %911, %v405_v18   ;;  %412 = vperm.xlu0 %910, %v404_v19   ;;  %v546_v41 = vsel %vm541_vm11, 1, %v948_v9  ;;  %v545_v42 = vsel %vm540_vm12, 1, %v948_v9  ;;  %vm633_vm13 = vcmp.eq.s32.totalorder %v1097_v47, %v632_v40  ;;  %vm542_vm14 = vcmp.eq.s32.totalorder %v1112_v50, %v538_v30 }
 0x1dc   : > { %v638_v43 = vsel %vm633_vm13, 1, %v948_v9  ;;  %v547_v44 = vsel %vm542_vm14, 1, %v948_v9  ;;  %vm587_vm15 = vcmp.eq.s32.totalorder %v1102_v48, %v585_v35  ;;  %vm637_vm0 = vcmp.eq.s32.totalorder %v1117_v51, %v632_v40 }
 0x1dd   : > { %v592_v45 = vsel %vm587_vm15, 1, %v948_v9  ;;  %v642_v46 = vsel %vm637_vm0, 1, %v948_v9  ;;  %vm589_vm1 = vcmp.eq.s32.totalorder %v1112_v50, %v585_v35  ;;  %vm588_vm2 = vcmp.eq.s32.totalorder %v1107_v49, %v585_v35 }
 0x1de   : > { %v679_v52 = vstv %s678_s23  ;;  %v594_v53 = vsel %vm589_vm1, 1, %v948_v9  ;;  %v593_v54 = vsel %vm588_vm2, 1, %v948_v9  ;;  %vm635_vm5 = vcmp.eq.s32.totalorder %v1107_v49, %v632_v40 }
 0x1df   : > { %421 = vperm.xlu1 %911, %v407_v21   ;;  %418 = vperm.xlu0 %910, %v406_v22   ;;  %vm684_vm3 = vcmp.eq.s32.totalorder %v1117_v51, %v679_v52  ;;  %vm680_vm4 = vcmp.eq.s32.totalorder %v1097_v47, %v679_v52  ;;  %vm634_vm6 = vcmp.eq.s32.totalorder %v1102_v48, %v632_v40  ;;  %v640_v58 = vsel %vm635_vm5, 1, %v948_v9 }
 0x1e0   : > { %v689_v55 = vsel %vm684_vm3, 1, %v948_v9  ;;  %v685_v57 = vsel %vm680_vm4, 1, %v948_v9  ;;  %v639_v59 = vsel %vm634_vm6, 1, %v948_v9  ;;  %vm681_vm7 = vcmp.eq.s32.totalorder %v1102_v48, %v679_v52 }
 0x1e1   : > { %vm636_vm8 = vcmp.eq.s32.totalorder %v1112_v50, %v632_v40  ;;  %v686_v61 = vsel %vm681_vm7, 1, %v948_v9  ;;  %vm683_vm9 = vcmp.eq.s32.totalorder %v1112_v50, %v679_v52  ;;  %vm682_vm10 = vcmp.eq.s32.totalorder %v1107_v49, %v679_v52 }
 0x1e2   : > { %v641_v62 = vsel %vm636_vm8, 1, %v948_v9  ;;  %v688_v63 = vsel %vm683_vm9, 1, %v948_v9  ;;  %v687_v1 = vsel %vm682_vm10, 1, %v948_v9 }
 0x1e3   : > { %459 = vperm.xlu1 %911, %v451_v23   ;;  %456 = vperm.xlu0 %910, %v450_v24  }
 0x1e7   : > { %465 = vperm.xlu1 %911, %v453_v26   ;;  %462 = vperm.xlu0 %910, %v452_v27  }
 0x1eb   : > { %503 = vperm.xlu1 %911, %v497_v28   ;;  %468 = vperm.xlu0 %910, %v454_v29  }
 0x1ef   : > { %515 = vperm.xlu1 %911, %v501_v31   ;;  %506 = vperm.xlu0 %910, %v498_v32  }
 0x1f3   : > { %562 = vperm.xlu1 %911, %v548_v33   ;;  %550 = vperm.xlu0 %910, %v544_v34  }
 0x1f7   : > { %512 = vperm.xlu1 %911, %v500_v36   ;;  %509 = vperm.xlu0 %910, %v499_v37  }
 0x1fb   : > { %609 = vperm.xlu1 %911, %v595_v38   ;;  %597 = vperm.xlu0 %910, %v591_v39  }
 0x1ff   : > { %556 = vperm.xlu1 %911, %v546_v41   ;;  %553 = vperm.xlu0 %910, %v545_v42  }
 0x203   : > { %644 = vperm.xlu1 %911, %v638_v43   ;;  %559 = vperm.xlu0 %910, %v547_v44  }
 0x207   : > { %600 = vperm.xlu1 %911, %v592_v45   ;;  %656 = vperm.xlu0 %910, %v642_v46  }
 0x20b   : > { %606 = vperm.xlu1 %911, %v594_v53   ;;  %603 = vperm.xlu0 %910, %v593_v54  }
 0x20f   : > { %703 = vperm.xlu1 %911, %v689_v55   ;;  %691 = vperm.xlu0 %910, %v685_v57  }
 0x213   : > { %650 = vperm.xlu1 %911, %v640_v58   ;;  %647 = vperm.xlu0 %910, %v639_v59  }
 0x217   : > { %694 = vperm.xlu1 %911, %v686_v61   ;;  %653 = vperm.xlu0 %910, %v641_v62  }
 0x21b   : > { %700 = vperm.xlu1 %911, %v688_v63   ;;  %697 = vperm.xlu0 %910, %v687_v1  }
 0x24e   : > { %v369_v2 = vpop.permute.xlu1 %368  ;;  %v363_v3 = vpop.permute.xlu0 %362 }
 0x24f   : > { %vm378_vm11 = vcmp.eq.s32.totalorder %v369_v2, 1  ;;  %vm376_vm13 = vcmp.eq.s32.totalorder %v363_v3, 1 }
 0x250   : > { %v383_v7 = vsel %vm378_vm11, %v1126_v0, 0.0  ;;  %v381_v9 = vsel %vm376_vm13, %v1122_v56, 0.0 }
 0x252   : > { %v372_v5 = vpop.permute.xlu1 %371  ;;  %v366_v6 = vpop.permute.xlu0 %365 }
 0x253   : > { %vm379_vm12 = vcmp.eq.s32.totalorder %v372_v5, 1  ;;  %vm377_vm14 = vcmp.eq.s32.totalorder %v366_v6, 1 }
 0x254   : > { %v384_v10 = vsel %vm379_vm12, %v1128_v4, 0.0  ;;  %v382_v16 = vsel %vm377_vm14, %v1124_v60, 0.0 }
 0x255   : > { %v388_v11 = vmax.f32 %v383_v7, %v384_v10 }
 0x256   : > { %v410_v12 = vpop.permute.xlu1 %409  ;;  %v375_v13 = vpop.permute.xlu0 %374 }
 0x257   : > { %vm380_vm15 = vcmp.eq.s32.totalorder %v375_v13, 1  ;;  %vm423_vm1 = vcmp.eq.s32.totalorder %v410_v12, 1 }
 0x258   : > { %v385_v14 = vsel %vm380_vm15, %v1130_v8, 0.0  ;;  %v428_v38 = vsel %vm423_vm1, %v1122_v56, 0.0 }
 0x259   : > { %v386_v15 = vmax.f32 %v381_v9, %v385_v14 }
 0x25a   : > { %v416_v17 = vpop.permute.xlu1 %415  ;;  %v413_v18 = vpop.permute.xlu0 %412 }
 0x25b   : > { %v387_v19 = vmax.f32 %v386_v15, %v382_v16  ;;  %vm425_vm3 = vcmp.eq.s32.totalorder %v416_v17, 1  ;;  %vm424_vm4 = vcmp.eq.s32.totalorder %v413_v18, 1 }
 0x25c   : > { %v430_v43 = vsel %vm425_vm3, %v1126_v0, 0.0  ;;  %v429_v44 = vsel %vm424_vm4, %v1124_v60, 0.0 }
 0x25d   : > { %v1245_v20 = vmax.f32 %v387_v19, %v388_v11 }
 0x25e   : > { %v422_v21 = vpop.permute.xlu1 %421  ;;  %v419_v22 = vpop.permute.xlu0 %418 }
 0x25f   : > { %vm427_vm0 = vcmp.eq.s32.totalorder %v422_v21, 1  ;;  %vm426_vm2 = vcmp.eq.s32.totalorder %v419_v22, 1 }
 0x260   : > { %v432_v35 = vsel %vm427_vm0, %v1130_v8, 0.0  ;;  %v431_v40 = vsel %vm426_vm2, %v1128_v4, 0.0 }
 0x261   : > { %v433_v39 = vmax.f32 %v428_v38, %v432_v35  ;;  %v435_v46 = vmax.f32 %v430_v43, %v431_v40  ;;  %v390_v40 = vrot.slane %v1245_v20, 4 }
 0x262   : > { %v460_v23 = vpop.permute.xlu1 %459  ;;  %v457_v24 = vpop.permute.xlu0 %456 }
 0x263   : > { %vm471_vm6 = vcmp.eq.s32.totalorder %v460_v23, 1  ;;  %vm470_vm7 = vcmp.eq.s32.totalorder %v457_v24, 1  ;;  %v434_v45 = vmax.f32 %v433_v39, %v429_v44 }
 0x264   : > { %v476_v53 = vsel %vm471_vm6, %v1124_v60, 0.0  ;;  %v475_v54 = vsel %vm470_vm7, %v1122_v56, 0.0 }
 0x265   : > { %v436_v12 = vmax.f32 %v434_v45, %v435_v46 }
 0x266   : > { %v466_v25 = vpop.permute.xlu1 %465  ;;  %v463_v26 = vpop.permute.xlu0 %462 }
 0x267   : > { %vm473_vm8 = vcmp.eq.s32.totalorder %v466_v25, 1  ;;  %vm472_vm10 = vcmp.eq.s32.totalorder %v463_v26, 1 }
 0x268   : > { %v478_v55 = vsel %vm473_vm8, %v1128_v4, 0.0  ;;  %v477_v61 = vsel %vm472_vm10, %v1126_v0, 0.0 }
 0x269   : > { %v482_v15 = vmax.f32 %v477_v61, %v478_v55 }
 0x26a   : > { %v504_v27 = vpop.permute.xlu1 %503  ;;  %v469_v28 = vpop.permute.xlu0 %468 }
 0x26b   : > { %vm474_vm5 = vcmp.eq.s32.totalorder %v469_v28, 1  ;;  %vm517_vm11 = vcmp.eq.s32.totalorder %v504_v27, 1 }
 0x26c   : > { %v479_v52 = vsel %vm474_vm5, %v1130_v8, 0.0  ;;  %v522_v62 = vsel %vm517_vm11, %v1122_v56, 0.0 }
 0x26d   : > { %v480_v63 = vmax.f32 %v475_v54, %v479_v52  ;;  %v391_v54 = vmax.f32 %v1245_v20, %v390_v40 }
 0x26e   : > { %v516_v29 = vpop.permute.xlu1 %515  ;;  %v1247_v30 = vpop.permute.xlu0 %506 }
 0x26f   : > { %vm521_vm9 = vcmp.eq.s32.totalorder %v516_v29, 1  ;;  %vm518_vm1 = vcmp.eq.s32.totalorder %v1247_v30, 1  ;;  %v481_v13 = vmax.f32 %v480_v63, %v476_v53  ;;  %v392_v20 = vrot.slane %v391_v54, 2 }
 0x270   : > { %v526_v57 = vsel %vm521_vm9, %v1130_v8, 0.0  ;;  %v523_v19 = vsel %vm518_vm1, %v1124_v60, 0.0 }
 0x271   : > { %v527_v1 = vmax.f32 %v522_v62, %v526_v57  ;;  %v483_v28 = vmax.f32 %v481_v13, %v482_v15 }
 0x272   : > { %v563_v31 = vpop.permute.xlu1 %562  ;;  %v551_v32 = vpop.permute.xlu0 %550 }
 0x273   : > { %vm568_vm14 = vcmp.eq.s32.totalorder %v563_v31, 1  ;;  %vm564_vm15 = vcmp.eq.s32.totalorder %v551_v32, 1  ;;  %v528_v26 = vmax.f32 %v527_v1, %v523_v19 }
 0x274   : > { %v573_v7 = vsel %vm568_vm14, %v1130_v8, 0.0  ;;  %v569_v10 = vsel %vm564_vm15, %v1122_v56, 0.0 }
 0x275   : > { %v574_v21 = vmax.f32 %v569_v10, %v573_v7 }
 0x276   : > { %v513_v33 = vpop.permute.xlu1 %512  ;;  %v510_v34 = vpop.permute.xlu0 %509 }
 0x277   : > { %vm520_vm12 = vcmp.eq.s32.totalorder %v513_v33, 1  ;;  %vm519_vm13 = vcmp.eq.s32.totalorder %v510_v34, 1  ;;  %v437_v33 = vrot.slane %v436_v12, 4 }
 0x278   : > { %v525_v2 = vsel %vm520_vm12, %v1128_v4, 0.0  ;;  %v524_v3 = vsel %vm519_vm13, %v1126_v0, 0.0 }
 0x279   : > { %v529_v16 = vmax.f32 %v524_v3, %v525_v2 }
 0x27a   : > { %v610_v36 = vpop.permute.xlu1 %609  ;;  %v598_v37 = vpop.permute.xlu0 %597 }
 0x27b   : > { %vm615_vm2 = vcmp.eq.s32.totalorder %v610_v36, 1  ;;  %vm611_vm3 = vcmp.eq.s32.totalorder %v598_v37, 1  ;;  %v530_v34 = vmax.f32 %v528_v26, %v529_v16 }
 0x27c   : > { %v620_v9 = vsel %vm615_vm2, %v1130_v8, 0.0  ;;  %v616_v14 = vsel %vm611_vm3, %v1122_v56, 0.0  ;;  %vm725_vm3 = vcmask 1040384  }
 0x27d   : > { %v621_v27 = vmax.f32 %v616_v14, %v620_v9  ;;  %v531_v43 = vrot.slane %v530_v34, 4 }
 0x27e   : > { %v557_v41 = vpop.permute.xlu1 %556  ;;  %v554_v42 = vpop.permute.xlu0 %553 }
 0x27f   : > { %vm566_vm4 = vcmp.eq.s32.totalorder %v557_v41, 1  ;;  %vm565_vm5 = vcmp.eq.s32.totalorder %v554_v42, 1  ;;  %v484_v41 = vrot.slane %v483_v28, 4  ;;  %v438_v42 = vmax.f32 %v436_v12, %v437_v33 }
 0x280   : > { %v571_v17 = vsel %vm566_vm4, %v1126_v0, 0.0  ;;  %v570_v18 = vsel %vm565_vm5, %v1124_v60, 0.0  ;;  %vm727_vm4 = vcmask 1041408   ;;  %vm729_vm5 = vcmask 1042432  }
 0x281   : > { %v575_v29 = vmax.f32 %v574_v21, %v570_v18  ;;  %v485_v55 = vmax.f32 %v483_v28, %v484_v41  ;;  %v439_v57 = vrot.slane %v438_v42, 2 }
 0x282   : > { %v1259_v58 = vpop.permute.xlu1 %644  ;;  %v560_v59 = vpop.permute.xlu0 %559 }
 0x283   : > { %vm567_vm0 = vcmp.eq.s32.totalorder %v560_v59, 1  ;;  %vm658_vm10 = vcmp.eq.s32.totalorder %v1259_v58, 1  ;;  %v532_v59 = vmax.f32 %v530_v34, %v531_v43  ;;  %v486_v7 = vrot.slane %v485_v55, 2 }
 0x284   : > { %v572_v11 = vsel %vm567_vm0, %v1128_v4, 0.0  ;;  %v663_v61 = vsel %vm658_vm10, %v1122_v56, 0.0  ;;  %v440_v14 = vmax.f32 %v438_v42, %v439_v57 }
 0x285   : > { %v576_v22 = vmax.f32 %v571_v17, %v572_v11  ;;  %v533_v12 = vrot.slane %v532_v59, 2 }
 0x286   : > { %v601_v5 = vpop.permute.xlu1 %600  ;;  %v657_v6 = vpop.permute.xlu0 %656  ;;  %v441_v33 = vrot.slane %v440_v14, 1 }
 0x287   : > { %vm612_vm6 = vcmp.eq.s32.totalorder %v601_v5, 1  ;;  %v577_v36 = vmax.f32 %v575_v29, %v576_v22  ;;  %vm662_vm9 = vcmp.eq.s32.totalorder %v657_v6, 1 }
 0x288   : > { %v617_v23 = vsel %vm612_vm6, %v1124_v60, 0.0  ;;  %v667_v52 = vsel %vm662_vm9, %v1130_v8, 0.0  ;;  %v442_v42 = vmax.f32 %v440_v14, %v441_v33  ;;  %vm731_vm6 = vcmask 1043456  }
 0x289   : > { %v622_v30 = vmax.f32 %v621_v27, %v617_v23  ;;  %v578_v44 = vrot.slane %v577_v36, 4  ;;  %v668_v63 = vmax.f32 %v663_v61, %v667_v52  ;;  %v393_v23 = vmax.f32 %v391_v54, %v392_v20 }
 0x28a   : > { %v607_v24 = vpop.permute.xlu1 %606  ;;  %v604_v25 = vpop.permute.xlu0 %603  ;;  %v534_v27 = vmax.f32 %v532_v59, %v533_v12  ;;  %vm737_vm9 = vcmask 1046528  }
 0x28b   : > { %vm614_vm7 = vcmp.eq.s32.totalorder %v607_v24, 1  ;;  %vm613_vm8 = vcmp.eq.s32.totalorder %v604_v25, 1  ;;  %v579_v62 = vmax.f32 %v577_v36, %v578_v44  ;;  %v487_v24 = vmax.f32 %v485_v55, %v486_v7 }
 0x28c   : > { %v619_v31 = vsel %vm614_vm7, %v1128_v4, 0.0  ;;  %v618_v32 = vsel %vm613_vm8, %v1126_v0, 0.0  ;;  %vm733_vm7 = vcmask 1044480   ;;  %vm735_vm8 = vcmask 1045504  }
 0x28d   : > { %v623_v35 = vmax.f32 %v618_v32, %v619_v31  ;;  %v580_v15 = vrot.slane %v579_v62, 2  ;;  %v488_v36 = vrot.slane %v487_v24, 1 }
 0x28e   : > { %v704_v37 = vpop.permute.xlu1 %703  ;;  %v692_v38 = vpop.permute.xlu0 %691 }
 0x28f   : > { %v624_v39 = vmax.f32 %v622_v30, %v623_v35  ;;  %vm709_vm11 = vcmp.eq.s32.totalorder %v704_v37, 1  ;;  %vm705_vm13 = vcmp.eq.s32.totalorder %v692_v38, 1  ;;  %v581_v32 = vmax.f32 %v579_v62, %v580_v15 }
 0x290   : > { %v714_v58 = vsel %vm709_vm11, %v1130_v8, 0.0  ;;  %v710_v6 = vsel %vm705_vm13, %v1122_v56, 0.0  ;;  %v394_v37 = vrot.slane %v393_v23, 1  ;;  %v535_v38 = vrot.slane %v534_v27, 1 }
 0x291   : > { %v625_v53 = vrot.slane %v624_v39, 4  ;;  %v715_v16 = vmax.f32 %v710_v6, %v714_v58  ;;  %v582_v41 = vrot.slane %v581_v32, 1  ;;  %v740_v6 = vld [vmem:[%s739_s24] sm:$0xff] }
 0x292   : > { %v651_v45 = vpop.permute.xlu1 %650  ;;  %v648_v46 = vpop.permute.xlu0 %647  ;;  %v395_v52 = vmax.f32 %v393_v23, %v394_v37 }
 0x293   : > { %vm659_vm12 = vcmp.eq.s32.totalorder %v648_v46, 1  ;;  %vm660_vm14 = vcmp.eq.s32.totalorder %v651_v45, 1  ;;  %v626_v5 = vmax.f32 %v624_v39, %v625_v53  ;;  %v489_v46 = vmax.f32 %v487_v24, %v488_v36 }
 0x294   : > { %v664_v1 = vsel %vm659_vm12, %v1124_v60, 0.0  ;;  %v665_v10 = vsel %vm660_vm14, %v1126_v0, 0.0  ;;  %v536_v53 = vmax.f32 %v534_v27, %v535_v38  ;;  %v583_v57 = vmax.f32 %v581_v32, %v582_v41 }
 0x295   : > { %v669_v13 = vmax.f32 %v668_v63, %v664_v1  ;;  %v627_v21 = vrot.slane %v626_v5, 2  ;;  %v726_v59 = vsel %vm725_vm3, %v395_v52, %v442_v42 }
 0x296   : > { %v695_v2 = vpop.permute.xlu1 %694  ;;  %v654_v3 = vpop.permute.xlu0 %653  ;;  %v728_v63 = vsel %vm727_vm4, %v726_v59, %v489_v46 }
 0x297   : > { %vm706_vm15 = vcmp.eq.s32.totalorder %v695_v2, 1  ;;  %vm661_vm0 = vcmp.eq.s32.totalorder %v654_v3, 1  ;;  %v628_v34 = vmax.f32 %v626_v5, %v627_v21  ;;  %v730_v1 = vsel %vm729_vm5, %v728_v63, %v536_v53 }
 0x298   : > { %v666_v11 = vsel %vm661_vm0, %v1128_v4, 0.0  ;;  %v711_v17 = vsel %vm706_vm15, %v1124_v60, 0.0  ;;  %v732_v3 = vsel %vm731_vm6, %v730_v1, %v583_v57 }
 0x299   : > { %v670_v9 = vmax.f32 %v665_v10, %v666_v11  ;;  %v716_v28 = vmax.f32 %v715_v16, %v711_v17  ;;  %v629_v43 = vrot.slane %v628_v34, 1 }
 0x29a   : > { %v701_v18 = vpop.permute.xlu1 %700  ;;  %v698_v19 = vpop.permute.xlu0 %697 }
 0x29b   : > { %v671_v22 = vmax.f32 %v669_v13, %v670_v9  ;;  %vm708_vm1 = vcmp.eq.s32.totalorder %v701_v18, 1  ;;  %vm707_vm2 = vcmp.eq.s32.totalorder %v698_v19, 1  ;;  %v630_v61 = vmax.f32 %v628_v34, %v629_v43 }
 0x29c   : > { %v713_v25 = vsel %vm708_vm1, %v1128_v4, 0.0  ;;  %v712_v26 = vsel %vm707_vm2, %v1126_v0, 0.0 }
 0x29d   : > { %v672_v29 = vrot.slane %v671_v22, 4  ;;  %v717_v31 = vmax.f32 %v712_v26, %v713_v25  ;;  %v734_v5 = vsel %vm733_vm7, %v732_v3, %v630_v61 }
 0x29f   : > { %v673_v30 = vmax.f32 %v671_v22, %v672_v29  ;;  %v718_v35 = vmax.f32 %v716_v28, %v717_v31 }
 0x2a1   : > { %v674_v39 = vrot.slane %v673_v30, 2  ;;  %v719_v40 = vrot.slane %v718_v35, 4 }
 0x2a3   : > { %v675_v44 = vmax.f32 %v673_v30, %v674_v39  ;;  %v720_v45 = vmax.f32 %v718_v35, %v719_v40 }
 0x2a5   : > { %v676_v54 = vrot.slane %v675_v44, 1  ;;  %v721_v55 = vrot.slane %v720_v45, 2 }
 0x2a7   : > { %v722_v62 = vmax.f32 %v720_v45, %v721_v55  ;;  %v677_v58 = vmax.f32 %v675_v44, %v676_v54 }
 0x2a9   : > { %v723_v2 = vrot.slane %v722_v62, 1  ;;  %v736_v7 = vsel %vm735_vm8, %v734_v5, %v677_v58 }
 0x2aa   :  { %348 = sbr.rel (!%p345_p1) target bundleno = 459 (0x1cb), region = 66 }
 0x2ab   : > { %v724_v20 = vmax.f32 %v722_v62, %v723_v2 }
 0x2ad   : > { %v738_v10 = vsel %vm737_vm9, %v736_v7, %v724_v20 }
 0x2ae   : > { %v741_v11 = vmax.f32 %v740_v6, %v738_v10 }
 0x2b0   : > { %742 = vst [vmem:[%s739_s24] sm:$0xff] %v741_v11 }
 0x2b1 PF:  { %s949_s5 = smov [#allocation5]  }
 0x2b2   :  { %s748_s6 = sshll.u32 %s949_s5, 4  ;;  %s749_s6 = int_to_ptr.vmem [resolvable:$true] %s748_s6 }
 0x2b3   :  { %s912_s25 = scalar_lea.vmem %s749_s6, 256  ;;  %p917_p3 = scmp.lt.s32.totalorder %s749_s6, %s749_s6 }
 0x2b4   :  { %p913_p2 = scmp.ne.s32.totalorder %s749_s6, %s912_s25  ;;  %p918_p4 = scmp.lt.s32.totalorder %s912_s25, %s912_s25 }
 0x2b6   :  { %p919_p5 = por %p918_p4, %p917_p3 }
 0x2b8   :  { %p920_p6 = pnand %p919_p5, %p913_p2 }
 0x2ba   :  { %923 = shalt.err (!%p920_p6)
}
 0x2bb   :  { %s924_s28 = scalar_lea.hbm %s1319_s8, 256 }
 0x2bc   :  { %p925_p7 = scmp.ne.s32.totalorder %s1319_s8, %s924_s28  ;;  %p928_p8 = scmp.lt.u32.totalorder %s924_s28, %s1319_s8 }
 0x2be   :  { %p930_p9 = pnand %p928_p8, %p925_p7 }
 0x2c0   :  { %933 = shalt.err (!%p930_p9)
}
 0x2c1   :  { %s950_s9 = smov 128   ;;  %s951_s10 = smov 8  }
 0x2c2   :  { %754 = dma.vmem_to_hbm [thread:$0]  %s749_s6, 256, %s1319_s8, [#allocation6], %s950_s9, %s950_s9, %s951_s10  }
 0x2c3   :  { %938 = dma.done.wait [#allocation6], 256  }
 0x2c4   :  { %939 = vsyncadd [#allocation6], 4294967040 }
 0x2c5   :  { %758 = vsyncpa [#allocation6], 1 }

</bundles_post_ra>
